<compile_context>
chip_gen: v7x
topology: tpu7x:2x2x1
jax: 0.10.0
libtpu: 0.0.40
codegen_flags: <defaults>
</compile_context>

<pallas_src>
import functools

import jax
import jax.numpy as jnp
from jax.experimental import pallas as pl
from jax.experimental.pallas import tpu as pltpu

# Module hyper-parameters (small H for the synthetic test, structure == module)
L_LEVELS = 5
H = 4
K = 8
S = 4
P = K // 2  # Conv / ConvTranspose padding used by the module

# T-tile cap (rows).  512 keeps double-buffered f32 in/out blocks well under
# v7x's 64 MiB VMEM; v5e/v6e could take 2-4x larger tiles.
TILE_T_CAP = 512
VMEM_LIMIT_BYTES = 32 * 1024 * 1024


def _round_up(n, m):
    return ((n + m - 1) // m) * m


# ----------------------------- Pallas kernel ------------------------------- #
def _level_kernel(x_ref, skip_ref, halo_ref, w1_ref, b1_ref, w2_ref, bt_ref,
                  o_ref, *, t_valid, tile_t, c_in, apply_relu):
    # x_ref, skip_ref : (tile_t, C_in)        f32
    # halo_ref        : (1, 1, C_in)          f32   (x+skip of NEXT tile row 0)
    # w1_ref          : (C_in, 2*C_in)        f32   (1x1 conv, both GLU halves)
    # b1_ref          : (1, 2*C_in)           f32
    # w2_ref          : (2*C_in, S*C_out)     f32   ([Wtop ; Wbot] stacked)
    # bt_ref          : (1, S*C_out)          f32   (bias tiled per phase)
    # o_ref           : (tile_t, S*C_out)     f32   lane-dense fused output
    t = pl.program_id(1)

    xs = x_ref[...] + skip_ref[...]                              # (tile_t, C_in)

    # 1x1 conv (single MXU pass for both GLU halves) + GLU.
    h = jnp.dot(xs, w1_ref[...], preferred_element_type=jnp.float32) + b1_ref[...]
    g = h[:, :c_in] * jax.nn.sigmoid(h[:, c_in:])                # (tile_t, C_in)

    # Halo: GLU output of the first row of the NEXT tile (1-row matmul).
    hh = jnp.dot(halo_ref[0], w1_ref[...],
                 preferred_element_type=jnp.float32) + b1_ref[...]
    gh = hh[:, :c_in] * jax.nn.sigmoid(hh[:, c_in:])             # (1, C_in)

    # g_shift[q] = g[global row q+1]; zero only past the true signal end.
    g_shift = jnp.concatenate([g[1:, :], gh], axis=0)            # (tile_t, C_in)
    src_row = (t * tile_t + 1
               + jax.lax.broadcasted_iota(jnp.int32, (tile_t, 1), 0))
    g_shift = jnp.where(src_row < t_valid, g_shift, 0.0)

    # ConvTranspose1d (stride-S polyphase): all S phases + both taps in ONE
    # matmul over the lane-concat [g_shift | g].
    g2 = jnp.concatenate([g_shift, g], axis=1)                   # (tile_t, 2*C_in)
    y = jnp.dot(g2, w2_ref[...], preferred_element_type=jnp.float32) + bt_ref[...]
    if apply_relu:
        y = jnp.maximum(y, 0.0)
    o_ref[...] = y


def _level_forward(x_nlc, skip_nlc, p):
    """One decoder level. x_nlc, skip_nlc: (B, T, C_in) -> (B, L_out, C_out)."""
    # Polyphase decomposition assumes the module defaults; fail loudly otherwise.
    assert K == 2 * S, "polyphase decomposition assumes K == 2*S"
    assert P == K // 2, "polyphase decomposition assumes padding == K//2"

    B, T, C_in = x_nlc.shape
    C_out = p["c_out"]
    n_out = S * C_out

    tile_t = min(TILE_T_CAP, _round_up(T, 8))     # sublane-aligned T tiles
    n_t = int(pl.cdiv(T, tile_t))
    T_pad = n_t * tile_t

    if T_pad != T:
        pad = ((0, 0), (0, T_pad - T), (0, 0))
        x_p = jnp.pad(x_nlc, pad)
        s_p = jnp.pad(skip_nlc, pad)
    else:
        x_p, s_p = x_nlc, skip_nlc

    # 1-row halo per tile: (x+skip) at global row (t+1)*tile_t (clamped; the
    # kernel masks it to zero when it is past the true end of the signal).
    halo_idx = jnp.minimum(jnp.arange(1, n_t + 1) * tile_t, T - 1)
    halo = (x_nlc[:, halo_idx, :] + skip_nlc[:, halo_idx, :]
            ).reshape(B, n_t, 1, C_in)

    kernel = functools.partial(_level_kernel, t_valid=T, tile_t=tile_t,
                               c_in=C_in, apply_relu=p["relu"])

    out = pl.pallas_call(
        kernel,
        out_shape=jax.ShapeDtypeStruct((B, T_pad, n_out), jnp.float32),
        grid=(B, n_t),
        in_specs=[
            pl.BlockSpec((None, tile_t, C_in), lambda b, t: (b, t, 0)),
            pl.BlockSpec((None, tile_t, C_in), lambda b, t: (b, t, 0)),
            pl.BlockSpec((None, 1, 1, C_in), lambda b, t: (b, t, 0, 0)),
            pl.BlockSpec((C_in, 2 * C_in), lambda b, t: (0, 0)),
            pl.BlockSpec((1, 2 * C_in), lambda b, t: (0, 0)),
            pl.BlockSpec((2 * C_in, n_out), lambda b, t: (0, 0)),
            pl.BlockSpec((1, n_out), lambda b, t: (0, 0)),
        ],
        out_specs=pl.BlockSpec((None, tile_t, n_out), lambda b, t: (b, t, 0)),
        compiler_params=pltpu.CompilerParams(
            dimension_semantics=("parallel", "parallel"),
            vmem_limit_bytes=VMEM_LIMIT_BYTES),
    )(x_p, s_p, halo, p["w1p"], p["b1p"], p["w2p"], p["btile"])

    l_out = (T - 1) * S - 2 * P + K + p["opad"]
    # glue: interleave phases (row-major identity reshape) and crop to the
    # ConvTranspose1d output length (also drops the padded tile rows).
    return out.reshape(B, T_pad * S, C_out)[:, :l_out, :]


def decoder_forward(x_ncl, skips_ncl, params):
    """x_ncl: (B, C0, T0) NCL like PyTorch; skips consumed via pop()."""
    # NCL -> NLC once up front (not per level inside the hot loop).
    # TODO(synk): have the encoder emit skips in NLC to drop these entirely.
    skips = [jnp.transpose(s, (0, 2, 1)) for s in skips_ncl]
    x = jnp.transpose(x_ncl, (0, 2, 1))
    for p in params:
        x = _level_forward(x, skips.pop(), p)
    return jnp.transpose(x, (0, 2, 1))            # NLC -> NCL


# --------------------------- parameter creation ----------------------------- #
def init_params(key):
    """PyTorch-layout params plus pre-packed kernel-layout copies (all the
    transposes / phase stacking / bias tiling hoisted out of the forward)."""
    params = []
    in_ch = H * 2 ** (L_LEVELS - 1)
    for i in range(L_LEVELS - 1, -1, -1):
        out_ch = H * 2 ** (i - 1) if i > 0 else 1
        key, k1, k2, k3, k4 = jax.random.split(key, 5)
        w1 = 0.1 * jax.random.normal(k1, (2 * in_ch, in_ch, 1), jnp.float32)
        b1 = 0.1 * jax.random.normal(k2, (2 * in_ch,), jnp.float32)
        wt = 0.1 * jax.random.normal(k3, (in_ch, out_ch, K), jnp.float32)
        bt = 0.1 * jax.random.normal(k4, (out_ch,), jnp.float32)
        if i == L_LEVELS - 1 or i == L_LEVELS - 2:
            opad = S - 1
        elif i == L_LEVELS - 3 or i == L_LEVELS - 4:
            opad = 1
        else:
            opad = 0

        # --- kernel-layout packing (done once, f32 everywhere) ---
        # 1x1 conv for x @ W1: (C_in, 2*C_in), cols [0:C_in] linear, [C_in:] gate.
        w1p = jnp.transpose(w1[:, :, 0])                       # (C_in, 2*C_in)
        b1p = b1.reshape(1, 2 * in_ch)
        # Phase-stacked ConvTranspose weights, stacked for [g_shift | g] @ W2:
        #   Wtop[:, r*C_out + c] = wt[:, c, r]   (taps r      = 0..S-1)
        #   Wbot[:, r*C_out + c] = wt[:, c, r+S] (taps r + S)
        wtop = jnp.transpose(wt[:, :, :S], (0, 2, 1)).reshape(in_ch, S * out_ch)
        wbot = jnp.transpose(wt[:, :, S:], (0, 2, 1)).reshape(in_ch, S * out_ch)
        w2p = jnp.concatenate([wtop, wbot], axis=0)            # (2*C_in, S*C_out)
        btile = jnp.tile(bt, S).reshape(1, S * out_ch)

        params.append(dict(w1=w1, b1=b1, wt=wt, bt=bt, opad=opad,
                           relu=(i > 0), c_out=out_ch,
                           w1p=w1p, b1p=b1p, w2p=w2p, btile=btile))
        in_ch = out_ch
    return params


# ----------------------------- pure-JAX reference --------------------------- #
def _ref_conv_transpose1d(g, wt, bt, opad):
    B, Ci, T = g.shape
    Co = wt.shape[1]
    l_full = (T - 1) * S + K
    full = jnp.zeros((B, Co, l_full), jnp.float32)
    for k in range(K):
        contrib = jnp.einsum('bct,co->bot', g, wt[:, :, k])
        full = full.at[:, :, k:k + (T - 1) * S + 1:S].add(contrib)
    l_out = (T - 1) * S - 2 * P + K + opad
    return full[:, :, P:P + l_out] + bt[None, :, None]


def ref_forward(x, skips, params):
    skips = list(skips)
    for p in params:
        x = x + skips.pop()
        h = jnp.einsum('bct,oc->bot', x, p["w1"][:, :, 0]) + p["b1"][None, :, None]
        C = x.shape[1]
        g = h[:, :C] * jax.nn.sigmoid(h[:, C:])
        y = _ref_conv_transpose1d(g, p["wt"], p["bt"], p["opad"])
        if p["relu"]:
            y = jnp.maximum(y, 0.0)
        x = y
    return x


# ----------------------------------- main ----------------------------------- #
if __name__ == "__main__":
    key = jax.random.PRNGKey(0)
    kp, kx, ks = jax.random.split(key, 3)
    params = init_params(kp)

    B, T0 = 2, 3
    C0 = H * 2 ** (L_LEVELS - 1)
    x = jax.random.normal(kx, (B, C0, T0), jnp.float32)

    # Build skip tensors: skip popped at level j matches the shape of x
    # entering level j.
    shapes = []
    c_in, t = C0, T0
    for p in params:
        shapes.append((B, c_in, t))
        t = (t - 1) * S - 2 * P + K + p["opad"]
        c_in = p["c_out"]
    skip_keys = jax.random.split(ks, len(shapes))
    skips_consume = [jax.random.normal(k_, sh, jnp.float32)
                     for k_, sh in zip(skip_keys, shapes)]
    skips = list(reversed(skips_consume))  # forward pops from the end

    out = decoder_forward(x, skips, params)
    out = jax.block_until_ready(out)

    ref = ref_forward(x, skips, params)
    ref = jax.block_until_ready(ref)
    assert out.shape == ref.shape == (B, 1, t), (out.shape, ref.shape, (B, 1, t))
    max_err = float(jnp.max(jnp.abs(out - ref)))
    if not bool(jnp.allclose(out, ref, rtol=1e-2, atol=1e-2)):
        raise AssertionError(f"kernel/reference mismatch, max abs err={max_err}")

    print("KERNEL_OK")
</pallas_src>

<mosaic_0001>
module attributes {stable_mosaic.version = 11 : i64} {
  func.func @_level_kernel(%arg0: i32, %arg1: i32, %arg2: memref<1x8x64xf32, #tpu.memory_space<vmem>>, %arg3: memref<1x8x64xf32, #tpu.memory_space<vmem>>, %arg4: memref<1x1x1x64xf32, #tpu.memory_space<vmem>>, %arg5: memref<64x128xf32, #tpu.memory_space<vmem>>, %arg6: memref<1x128xf32, #tpu.memory_space<vmem>>, %arg7: memref<128x128xf32, #tpu.memory_space<vmem>>, %arg8: memref<1x128xf32, #tpu.memory_space<vmem>>, %arg9: memref<1x8x128xf32, #tpu.memory_space<vmem>>) attributes {dimension_semantics = [#tpu.dimension_semantics<parallel>, #tpu.dimension_semantics<parallel>], iteration_bounds = array<i64: 2, 1>, scalar_prefetch = 0 : i64, scratch_operands = 0 : i64, tpu.core_type = #tpu.core_type<tc>, window_params = [{transform_indices = @transform_0, window_bounds = array<i64: 1, 8, 64>}, {transform_indices = @transform_1, window_bounds = array<i64: 1, 8, 64>}, {transform_indices = @transform_2, window_bounds = array<i64: 1, 1, 1, 64>}, {pipeline_mode = #tpu.pipeline_mode<synchronous>, transform_indices = @transform_3, window_bounds = array<i64: 64, 128>}, {pipeline_mode = #tpu.pipeline_mode<synchronous>, transform_indices = @transform_4, window_bounds = array<i64: 1, 128>}, {pipeline_mode = #tpu.pipeline_mode<synchronous>, transform_indices = @transform_5, window_bounds = array<i64: 128, 128>}, {pipeline_mode = #tpu.pipeline_mode<synchronous>, transform_indices = @transform_6, window_bounds = array<i64: 1, 128>}, {transform_indices = @transform_7, window_bounds = array<i64: 1, 8, 128>}]} {
    %c0 = arith.constant 0 : index
    %c0_0 = arith.constant 0 : index
    %c0_1 = arith.constant 0 : index
    %0 = vector.load %arg2[%c0, %c0_0, %c0_1] : memref<1x8x64xf32, #tpu.memory_space<vmem>>, vector<1x8x64xf32>
    %1 = vector.shape_cast %0 : vector<1x8x64xf32> to vector<8x64xf32>
    %c0_2 = arith.constant 0 : index
    %c0_3 = arith.constant 0 : index
    %c0_4 = arith.constant 0 : index
    %2 = vector.load %arg3[%c0_2, %c0_3, %c0_4] : memref<1x8x64xf32, #tpu.memory_space<vmem>>, vector<1x8x64xf32>
    %3 = vector.shape_cast %2 : vector<1x8x64xf32> to vector<8x64xf32>
    %4 = arith.addf %1, %3 : vector<8x64xf32>
    %c0_5 = arith.constant 0 : index
    %c0_6 = arith.constant 0 : index
    %5 = vector.load %arg5[%c0_5, %c0_6] : memref<64x128xf32, #tpu.memory_space<vmem>>, vector<64x128xf32>
    %cst = arith.constant dense<0.000000e+00> : vector<8x128xf32>
    %6 = tpu.matmul %4, %5, %cst {dimension_numbers = #tpu.dot_dimension_numbers<[1], [0], [0], [1], [0, 0, 1, 1], [], []>} : vector<8x64xf32>, vector<64x128xf32>, vector<8x128xf32> -> vector<8x128xf32>
    %c0_7 = arith.constant 0 : index
    %c0_8 = arith.constant 0 : index
    %7 = vector.load %arg6[%c0_7, %c0_8] : memref<1x128xf32, #tpu.memory_space<vmem>>, vector<1x128xf32>
    %8 = vector.broadcast %7 : vector<1x128xf32> to vector<8x128xf32>
    %9 = arith.addf %6, %8 : vector<8x128xf32>
    %10 = vector.extract_strided_slice %9 {offsets = [0, 0], sizes = [8, 64], strides = [1, 1]} : vector<8x128xf32> to vector<8x64xf32>
    %11 = vector.extract_strided_slice %9 {offsets = [0, 64], sizes = [8, 64], strides = [1, 1]} : vector<8x128xf32> to vector<8x64xf32>
    %12 = arith.negf %11 : vector<8x64xf32>
    %13 = math.exp %12 : vector<8x64xf32>
    %cst_9 = arith.constant 1.000000e+00 : f32
    %14 = vector.broadcast %cst_9 : f32 to vector<8x64xf32>
    %15 = arith.addf %14, %13 : vector<8x64xf32>
    %16 = arith.divf %14, %15 : vector<8x64xf32>
    %17 = arith.mulf %10, %16 : vector<8x64xf32>
    %c0_10 = arith.constant 0 : index
    %c0_11 = arith.constant 0 : index
    %c0_12 = arith.constant 0 : index
    %c0_13 = arith.constant 0 : index
    %18 = vector.load %arg4[%c0_10, %c0_11, %c0_12, %c0_13] : memref<1x1x1x64xf32, #tpu.memory_space<vmem>>, vector<1x1x1x64xf32>
    %19 = vector.shape_cast %18 : vector<1x1x1x64xf32> to vector<1x64xf32>
    %c0_14 = arith.constant 0 : index
    %c0_15 = arith.constant 0 : index
    %20 = vector.load %arg5[%c0_14, %c0_15] : memref<64x128xf32, #tpu.memory_space<vmem>>, vector<64x128xf32>
    %cst_16 = arith.constant dense<0.000000e+00> : vector<1x128xf32>
    %21 = tpu.matmul %19, %20, %cst_16 {dimension_numbers = #tpu.dot_dimension_numbers<[1], [0], [0], [1], [0, 0, 1, 1], [], []>} : vector<1x64xf32>, vector<64x128xf32>, vector<1x128xf32> -> vector<1x128xf32>
    %c0_17 = arith.constant 0 : index
    %c0_18 = arith.constant 0 : index
    %22 = vector.load %arg6[%c0_17, %c0_18] : memref<1x128xf32, #tpu.memory_space<vmem>>, vector<1x128xf32>
    %23 = arith.addf %21, %22 : vector<1x128xf32>
    %24 = vector.extract_strided_slice %23 {offsets = [0, 0], sizes = [1, 64], strides = [1, 1]} : vector<1x128xf32> to vector<1x64xf32>
    %25 = vector.extract_strided_slice %23 {offsets = [0, 64], sizes = [1, 64], strides = [1, 1]} : vector<1x128xf32> to vector<1x64xf32>
    %26 = arith.negf %25 : vector<1x64xf32>
    %27 = math.exp %26 : vector<1x64xf32>
    %cst_19 = arith.constant 1.000000e+00 : f32
    %28 = vector.broadcast %cst_19 : f32 to vector<1x64xf32>
    %29 = arith.addf %28, %27 : vector<1x64xf32>
    %30 = arith.divf %28, %29 : vector<1x64xf32>
    %31 = arith.mulf %24, %30 : vector<1x64xf32>
    %32 = vector.extract_strided_slice %17 {offsets = [1, 0], sizes = [7, 64], strides = [1, 1]} : vector<8x64xf32> to vector<7x64xf32>
    %33 = tpu.concatenate %32, %31 in 0 : vector<7x64xf32>, vector<1x64xf32> -> vector<8x64xf32>
    %c8_i32 = arith.constant 8 : i32
    %34 = arith.muli %arg1, %c8_i32 : i32
    %c1_i32 = arith.constant 1 : i32
    %35 = arith.addi %34, %c1_i32 : i32
    %36 = tpu.iota {dimensions = array<i32: 0>} : vector<8x1xi32>
    %37 = vector.broadcast %35 : i32 to vector<8x1xi32>
    %38 = arith.addi %37, %36 : vector<8x1xi32>
    %c3_i32 = arith.constant 3 : i32
    %39 = vector.broadcast %c3_i32 : i32 to vector<8x1xi32>
    %40 = arith.cmpi slt, %38, %39 : vector<8x1xi32>
    %cst_20 = arith.constant 0.000000e+00 : f32
    %41 = vector.shape_cast %40 : vector<8x1xi1> to vector<8x1xi1>
    %42 = vector.broadcast %41 : vector<8x1xi1> to vector<8x64xi1>
    %43 = vector.broadcast %cst_20 : f32 to vector<8x64xf32>
    %44 = arith.select %42, %33, %43 : vector<8x64xi1>, vector<8x64xf32>
    %45 = tpu.concatenate %44, %17 in 1 : vector<8x64xf32>, vector<8x64xf32> -> vector<8x128xf32>
    %c0_21 = arith.constant 0 : index
    %c0_22 = arith.constant 0 : index
    %46 = vector.load %arg7[%c0_21, %c0_22] : memref<128x128xf32, #tpu.memory_space<vmem>>, vector<128x128xf32>
    %cst_23 = arith.constant dense<0.000000e+00> : vector<8x128xf32>
    %47 = tpu.matmul %45, %46, %cst_23 {dimension_numbers = #tpu.dot_dimension_numbers<[1], [0], [0], [1], [0, 0, 1, 1], [], []>} : vector<8x128xf32>, vector<128x128xf32>, vector<8x128xf32> -> vector<8x128xf32>
    %c0_24 = arith.constant 0 : index
    %c0_25 = arith.constant 0 : index
    %48 = vector.load %arg8[%c0_24, %c0_25] : memref<1x128xf32, #tpu.memory_space<vmem>>, vector<1x128xf32>
    %49 = vector.broadcast %48 : vector<1x128xf32> to vector<8x128xf32>
    %50 = arith.addf %47, %49 : vector<8x128xf32>
    %cst_26 = arith.constant 0.000000e+00 : f32
    %51 = vector.broadcast %cst_26 : f32 to vector<8x128xf32>
    %52 = arith.maximumf %50, %51 : vector<8x128xf32>
    %c0_27 = arith.constant 0 : index
    %c0_28 = arith.constant 0 : index
    %c0_29 = arith.constant 0 : index
    %53 = vector.load %arg9[%c0_27, %c0_28, %c0_29] : memref<1x8x128xf32, #tpu.memory_space<vmem>>, vector<1x8x128xf32>
    %54 = vector.shape_cast %53 : vector<1x8x128xf32> to vector<8x128xf32>
    %55 = vector.shape_cast %52 : vector<8x128xf32> to vector<1x8x128xf32>
    tpu.vector_store %arg9[%c0_27, %c0_28, %c0_29], %55 {strides = array<i32>} : memref<1x8x128xf32, #tpu.memory_space<vmem>>, vector<1x8x128xf32>,
    return
  }
  func.func @transform_0(%arg0: i32, %arg1: i32) -> (i32, i32, i32) {
    %c0_i32 = arith.constant 0 : i32
    %c0_i32_0 = arith.constant 0 : i32
    return %arg0, %arg1, %c0_i32 : i32, i32, i32
  }
  func.func @transform_1(%arg0: i32, %arg1: i32) -> (i32, i32, i32) {
    %c0_i32 = arith.constant 0 : i32
    %c0_i32_0 = arith.constant 0 : i32
    return %arg0, %arg1, %c0_i32 : i32, i32, i32
  }
  func.func @transform_2(%arg0: i32, %arg1: i32) -> (i32, i32, i32, i32) {
    %c0_i32 = arith.constant 0 : i32
    %c0_i32_0 = arith.constant 0 : i32
    %c0_i32_1 = arith.constant 0 : i32
    return %arg0, %arg1, %c0_i32, %c0_i32_0 : i32, i32, i32, i32
  }
  func.func @transform_3(%arg0: i32, %arg1: i32) -> (i32, i32) {
    %c0_i32 = arith.constant 0 : i32
    %c0_i32_0 = arith.constant 0 : i32
    %c0_i32_1 = arith.constant 0 : i32
    return %c0_i32, %c0_i32_0 : i32, i32
  }
  func.func @transform_4(%arg0: i32, %arg1: i32) -> (i32, i32) {
    %c0_i32 = arith.constant 0 : i32
    %c0_i32_0 = arith.constant 0 : i32
    %c0_i32_1 = arith.constant 0 : i32
    return %c0_i32, %c0_i32_0 : i32, i32
  }
  func.func @transform_5(%arg0: i32, %arg1: i32) -> (i32, i32) {
    %c0_i32 = arith.constant 0 : i32
    %c0_i32_0 = arith.constant 0 : i32
    %c0_i32_1 = arith.constant 0 : i32
    return %c0_i32, %c0_i32_0 : i32, i32
  }
  func.func @transform_6(%arg0: i32, %arg1: i32) -> (i32, i32) {
    %c0_i32 = arith.constant 0 : i32
    %c0_i32_0 = arith.constant 0 : i32
    %c0_i32_1 = arith.constant 0 : i32
    return %c0_i32, %c0_i32_0 : i32, i32
  }
  func.func @transform_7(%arg0: i32, %arg1: i32) -> (i32, i32, i32) {
    %c0_i32 = arith.constant 0 : i32
    %c0_i32_0 = arith.constant 0 : i32
    return %arg0, %arg1, %c0_i32 : i32, i32, i32
  }
}

</mosaic_0001>

<bundles_post_ra>
// kernel: tpu_custom_call.1
= control target key start
LH: loop header
LB: loop body
LE: loop exit
PB: predicated region body
PF: predicated region fallthrough
CT: control target
= control target key end

     0   :  { %s1739_s0 = inlined_call_operand.hbm [shape: f32[2,8,64], index: 0, kind: input, shape index: {}]   ;;  %s1740_s1 = inlined_call_operand.hbm [shape: f32[2,8,64], index: 1, kind: input, shape index: {}]   ;;  %s1741_s2 = inlined_call_operand.vmem [shape: f32[2,1,1,64], index: 2, kind: input, shape index: {}]   ;;  %s1742_s3 = inlined_call_operand.hbm [shape: f32[64,128], index: 3, kind: input, shape index: {}]   ;;  %s1743_s4 = inlined_call_operand.vmem [shape: f32[1,128], index: 4, kind: input, shape index: {}]   ;;  %s1744_s5 = inlined_call_operand.hbm [shape: f32[128,128], index: 5, kind: input, shape index: {}]   ;;  %s1745_s6 = inlined_call_operand.vmem [shape: f32[1,128], index: 6, kind: input, shape index: {}]   ;;  %s1746_s7 = inlined_call_operand.hbm [shape: f32[2,8,128], index: 7, kind: output, shape index: {}]  }
   0x1   :  { %1754 = sst [smem:[#allocation20_spill]] %s1742_s3 }
   0x2   :  { %1755 = sst [smem:[#allocation21_spill]] %s1744_s5 }
   0x3   :  { %12 = vsyncpa [#allocation3], 0 }
   0x4   :  { %14 = vsyncpa [#allocation3 + $0x1], 0 }
   0x5   :  { %15 = vsyncpa [#allocation6], 0 }
   0x6   :  { %17 = vsyncpa [#allocation6 + $0x1], 0 }
   0x7   :  { %18 = vsyncpa [#allocation9], 0 }
   0x8   :  { %19 = vsyncpa [#allocation4], 0 }
   0x9   :  { %21 = vsyncpa [#allocation4 + $0x1], 0  ;;  %s1406_s24 = smov 0   ;;  %s1408_s25 = smov 0  }
   0xa   :  { %s1410_s26 = smov 0   ;;  %s1412_s27 = smov 0  }
   0xb   :  { %s1414_s28 = smov 0   ;;  %s1416_s29 = smov 0  }
   0xc LB: > { %1756 = sst [smem:[#allocation16_spill]] %s1349_s28  ;;  %s1437_s30 = sadd.s32 4294967295, %s1353_s29   ;;  %s1353_s29 = sphi %s1416_s29, %s27_s29   ;;  %s1349_s28 = sphi %s1414_s28, %s1781_s28   ;;  %s1345_s27 = sphi %s1412_s27, %s1780_s27   ;;  %s1341_s26 = sphi %s1410_s26, %s1784_s26   ;;  %s1337_s25 = sphi %s1408_s25, %s1783_s25   ;;  %s1333_s24 = sphi %s1406_s24, %s1782_s24  }
   0xd   : > { %s861_s8 = sadd.s32 4294967294, %s1353_s29   ;;  %p61_p0 = scmp.ne.s32.totalorder %s1337_s25, %s1333_s24 }
   0xe   : > { %p1747_p1 = scmp.eq.s32.totalorder %s1437_s30, 0  ;;  %p233_p3 = scmp.eq.s32.totalorder %s861_s8, 1 }
   0xf   : > { %p862_p5 = scmp.ge.s32.totalorder %s1353_s29, 1  ;;  %p240_p7 = scmp.lt.s32.totalorder %s1353_s29, 3 }
  0x10   : > { %p1446_p4 = por %p1747_p1, %p61_p0  ;;  %p1451_p6 = por %p233_p3, %p61_p0 }
  0x11   : > { %p1456_p8 = pnand %p862_p5, %p240_p7  ;;  %s1355_s12 = smov [#allocation7]  }
  0x12   : > { %s1757_s9 = scalar_select %p1446_p4, 1, 0 }
  0x13   : > { %s1758_s10 = scalar_select %p1451_p6, 1, 0 }
  0x14   : > { %s1760_s11 = scalar_select %p1456_p8, 1, 0 }
  0x15   : > { %1759 = sst [smem:[#allocation17_spill]] %s1758_s10  ;;  %s252_s13 = sshll.u32 %s1355_s12, 4  ;;  %s1460_s13 = int_to_ptr.vmem [resolvable:$true] %s252_s13 }
  0x16   : > { %p1055_p9 = pneg %p1456_p8  ;;  %s1356_s15 = smov [#allocation8]  }
  0x17   : > { %s268_s16 = sshll.u32 %s1356_s15, 4  ;;  %s1762_s3 = sld [smem:[#allocation20_spill]]  ;;  %s1471_s16 = int_to_ptr.vmem [resolvable:$true] %s268_s16 }
  0x18   : > { %p1467_p11 = pnand %p1055_p9, %p1747_p1 }
  0x1a   : > { %p1145_p13 = pneg %p1467_p11 }
  0x1d   : > { %s1143_s19 = scalar_lea.hbm %s1762_s3, 1024 }
  0x1e   : > { %p1144_p12 = scmp.ne.s32.totalorder %s1762_s3, %s1143_s19  ;;  %p1150_p5 = scmp.lt.u32.totalorder %s1143_s19, %s1762_s3 }
  0x20   : > { %p1146_p0 = pnand %p1145_p13, %p1144_p12 }
  0x22   : > { %p1147_p3 = pneg %p1146_p0 }
  0x24   : > { %p1152_p7 = pnand %p1150_p5, %p1147_p3 }
  0x26   : > { %1155 = shalt.err (!%p1152_p7)
}
  0x27   : > { %s1156_s8 = scalar_lea.vmem %s1460_s13, 1024  ;;  %p1164_p2 = scmp.lt.s32.totalorder %s1460_s13, %s1460_s13 }
  0x28   : > { %p1157_p9 = scmp.ne.s32.totalorder %s1460_s13, %s1156_s8  ;;  %p1165_p12 = scmp.lt.s32.totalorder %s1156_s8, %s1156_s8 }
  0x2a   : > { %p1159_p10 = pnand %p1157_p9, %p1145_p13  ;;  %p1166_p0 = por %p1165_p12, %p1164_p2 }
  0x2c   : > { %p1160_p1 = pneg %p1159_p10 }
  0x2e   : > { %p1167_p6 = pnand %p1166_p0, %p1160_p1 }
  0x30   : > { %1170 = shalt.err (!%p1167_p6)
}
  0x31   : > { %s1357_s12 = smov 128   ;;  %s1358_s15 = smov 8  }
  0x32   : > { %1058 = dma.hbm_to_vmem [thread:$0]  (!%p1467_p11), %s1762_s3, 1024, %s1460_s13, [#allocation6], %s1357_s12, %s1357_s12, %s1358_s15  }
  0x33   : > { %s1763_s5 = sld [smem:[#allocation21_spill]] }
  0x39   : > { %s1171_s21 = scalar_lea.hbm %s1763_s5, 2048 }
  0x3a   : > { %p1172_p2 = scmp.ne.s32.totalorder %s1763_s5, %s1171_s21  ;;  %p1178_p10 = scmp.lt.u32.totalorder %s1171_s21, %s1763_s5 }
  0x3c   : > { %p1174_p1 = pnand %p1172_p2, %p1145_p13 }
  0x3e   : > { %p1175_p6 = pneg %p1174_p1 }
  0x40   : > { %p1180_p3 = pnand %p1178_p10, %p1175_p6 }
  0x42   : > { %1183 = shalt.err (!%p1180_p3)
}
  0x43   : > { %s1184_s13 = scalar_lea.vmem %s1471_s16, 2048  ;;  %p1192_p12 = scmp.lt.s32.totalorder %s1471_s16, %s1471_s16 }
  0x44   : > { %p1185_p5 = scmp.ne.s32.totalorder %s1471_s16, %s1184_s13  ;;  %p1193_p0 = scmp.lt.s32.totalorder %s1184_s13, %s1184_s13 }
  0x46   : > { %p1187_p7 = pnand %p1185_p5, %p1145_p13  ;;  %p1194_p2 = por %p1193_p0, %p1192_p12 }
  0x48   : > { %p1188_p9 = pneg %p1187_p7 }
  0x4a   : > { %p1195_p1 = pnand %p1194_p2, %p1188_p9 }
  0x4c   : > { %1198 = shalt.err (!%p1195_p1)
}
  0x4d   : > { %1061 = dma.hbm_to_vmem [thread:$0]  (!%p1467_p11), %s1763_s5, 2048, %s1471_s16, [#allocation9], %s1357_s12, %s1357_s12, %s1358_s15  }
  0x4e   : > { %s39_s18 = sadd.s32 1, %s1349_s28  ;;  %s48_s19 = sadd.s32 1, %s1341_s26 }
  0x4f   : > { %p41_p13 = scmp.ge.s32.totalorder %s39_s18, 2  ;;  %p55_p6 = scmp.ne.s32.totalorder %s1341_s26, %s1337_s25 }
  0x50   : > { %p56_p10 = scmp.eq.s32.totalorder %s1353_s29, 0  ;;  %p1075_p3 = scmp.lt.s32.totalorder %s1353_s29, 2 }
  0x51   : > { %s1786_s18 = smov (%p41_p13, %s39_s18), 0  ;;  %p1765_p7 = scmp.eq.s32.totalorder %s1437_s30, 1 }
  0x52   : > { %1764 = sst [smem:[#allocation18_spill]] %s1786_s18  ;;  %p57_p5 = por %p56_p10, %p55_p6 }
  0x53   : > { %p1535_p9 = por %p1765_p7, %p55_p6  ;;  %s43_s20 = ssub.s32 %s1349_s28, %s1786_s18 }
  0x54   : > { %s285_s21 = sand.u32 1, %s1341_s26   ;;  %p46_p12 = scmp.eq.s32.totalorder %s43_s20, 0 }
  0x55   : > { %s1766_s14 = scalar_select %p1535_p9, 1, 0 }
  0x56   : > { %s1542_s16 = sshll.u32 %s285_s21, 3  ;;  %s867_s12 = sshll.u32 %s1349_s28, 7 }
  0x57   : > { %s1546_s15 = scalar_select %p46_p12, %s1341_s26, %s48_s19  }
  0x58   : > { %s1551_s8 = scalar_lea.hbm %s1739_s0, %s867_s12  ;;  %s289_s13 = scalar_lea.vmem [#allocation2], %s1542_s16 }
  0x59   : > { %1767 = sst [smem:[#allocation19_spill]] %s1546_s15  ;;  %s297_s10 = sshll.u32 %s289_s13, 4  ;;  %s1560_s10 = int_to_ptr.vmem [resolvable:$true] %s297_s10 }
  0x5a   : > { %p1556_p11 = pnand %p1075_p3, %p57_p5  ;;  %s1565_s22 = scalar_lea.hbm %s1740_s1, %s867_s12 }
  0x5b   : > { %s286_s23 = scalar_lea.sflag [#allocation3], %s285_s21  ;;  %s1199_s3 = scalar_lea.hbm %s1551_s8, 128 }
  0x5c   : > { %p1200_p0 = scmp.ne.s32.totalorder %s1551_s8, %s1199_s3  ;;  %p1201_p2 = pneg %p1556_p11 }
  0x5d   : > { %s1204_s18 = scalar_lea.hbm %s1739_s0, 256  ;;  %p1205_p6 = scmp.lt.u32.totalorder %s1551_s8, %s1739_s0 }
  0x5e   : > { %p1202_p1 = pnand %p1201_p2, %p1200_p0  ;;  %p1206_p10 = scmp.lt.u32.totalorder %s1204_s18, %s1199_s3 }
  0x5f   : > { %p1208_p5 = scmp.lt.u32.totalorder %s1199_s3, %s1551_s8 }
  0x60   : > { %p1203_p13 = pneg %p1202_p1  ;;  %p1207_p3 = por %p1206_p10, %p1205_p6 }
  0x62   : > { %p1209_p7 = por %p1208_p5, %p1207_p3 }
  0x64   : > { %p1210_p12 = pnand %p1209_p7, %p1203_p13 }
  0x66   : > { %1213 = shalt.err (!%p1210_p12)
}
  0x67   : > { %s1214_s21 = scalar_lea.vmem %s1560_s10, 128  ;;  %s1359_s5 = smov [#allocation2]  }
  0x68   : > { %p1215_p0 = scmp.ne.s32.totalorder %s1560_s10, %s1214_s21  ;;  %s1219_s12 = sshll.u32 %s1359_s5, 4  ;;  %s1220_s12 = int_to_ptr.vmem [resolvable:$false] %s1219_s12 }
  0x69   : > { %s1221_s28 = scalar_lea.vmem %s1220_s12, 256  ;;  %p1222_p4 = scmp.lt.s32.totalorder %s1560_s10, %s1220_s12 }
  0x6a   : > { %p1217_p1 = pnand %p1215_p0, %p1201_p2  ;;  %p1223_p6 = scmp.lt.s32.totalorder %s1221_s28, %s1214_s21 }
  0x6c   : > { %p1218_p9 = pneg %p1217_p1  ;;  %p1224_p10 = por %p1223_p6, %p1222_p4 }
  0x6e   : > { %p1225_p3 = pnand %p1224_p10, %p1218_p9 }
  0x70   : > { %1228 = shalt.err (!%p1225_p3)
}
  0x71   : > { %1065 = dma.hbm_to_vmem [thread:$0]  (!%p1556_p11), %s1551_s8, 128, %s1560_s10, %s286_s23  }
  0x72   : > { %s304_s3 = sand.u32 1, %s1353_s29   ;;  %s308_s18 = scalar_lea.vmem [#allocation5], %s1542_s16 }
  0x73   : > { %s316_s15 = sshll.u32 %s308_s18, 4  ;;  %s305_s19 = scalar_lea.sflag [#allocation6], %s304_s3  ;;  %s317_s15 = int_to_ptr.vmem [resolvable:$true] %s316_s15 }
  0x74   : > { %s1229_s20 = scalar_lea.hbm %s1565_s22, 128  ;;  %s1234_s5 = scalar_lea.hbm %s1740_s1, 256 }
  0x75   : > { %p1230_p4 = scmp.ne.s32.totalorder %s1565_s22, %s1229_s20  ;;  %p1235_p5 = scmp.lt.u32.totalorder %s1565_s22, %s1740_s1 }
  0x76   : > { %p1236_p7 = scmp.lt.u32.totalorder %s1234_s5, %s1229_s20  ;;  %p1238_p0 = scmp.lt.u32.totalorder %s1229_s20, %s1565_s22 }
  0x77   : > { %p1232_p9 = pnand %p1230_p4, %p1201_p2 }
  0x78   : > { %p1237_p12 = por %p1236_p7, %p1235_p5 }
  0x79   : > { %p1233_p13 = pneg %p1232_p9 }
  0x7a   : > { %p1239_p1 = por %p1238_p0, %p1237_p12 }
  0x7c   : > { %p1240_p6 = pnand %p1239_p1, %p1233_p13 }
  0x7e   : > { %1243 = shalt.err (!%p1240_p6)
}
  0x7f   : > { %s1244_s16 = scalar_lea.vmem %s317_s15, 128  ;;  %s1360_s8 = smov [#allocation5]  }
  0x80   : > { %p1245_p10 = scmp.ne.s32.totalorder %s317_s15, %s1244_s16  ;;  %s1249_s10 = sshll.u32 %s1360_s8, 4  ;;  %s1250_s10 = int_to_ptr.vmem [resolvable:$false] %s1249_s10 }
  0x81   : > { %s1251_s23 = scalar_lea.vmem %s1250_s10, 256  ;;  %p1252_p9 = scmp.lt.s32.totalorder %s317_s15, %s1250_s10 }
  0x82   : > { %p1247_p3 = pnand %p1245_p10, %p1201_p2  ;;  %p1253_p8 = scmp.lt.s32.totalorder %s1251_s23, %s1244_s16 }
  0x84   : > { %p1248_p4 = pneg %p1247_p3  ;;  %p1254_p5 = por %p1253_p8, %p1252_p9 }
  0x86   : > { %p1255_p7 = pnand %p1254_p5, %p1248_p4 }
  0x88   : > { %1258 = shalt.err (!%p1255_p7)
}
  0x89   : > { %1068 = dma.hbm_to_vmem [thread:$0]  (!%p1556_p11), %s1565_s22, 128, %s317_s15, %s305_s19  }
  0x8a   : > { %p1769_p13 = scmp.ne.s32.totalorder %s1760_s11, 0 }
  0x8b   : > { %s1616_s3 = sand.u32 (!%p1769_p13), 1, %s1337_s25   ;;  %p1770_p8 = scmp.ne.s32.totalorder (!%p1769_p13), %s1757_s9, 0 }
  0x8c   : > { %334 = sbr.rel (%p1769_p13) target bundleno = 880 (0x370), region = 48  ;;  %s1619_s18 = sshll.u32 (!%p1769_p13), %s1616_s3, 3 }
  0x8d   : > { %s337_s20 = scalar_lea.sflag (!%p1769_p13), [#allocation3], %s1616_s3  ;;  %s340_s13 = scalar_lea.vmem (!%p1769_p13), [#allocation2], %s1619_s18 }
  0x93   : > { %1312 = dma.done.wait (%p1770_p8), %s337_s20, 128  }
  0x94   : > { %1314 = vsyncadd (%p1770_p8), %s337_s20, 4294967168  ;;  %s345_s11 = sand.u32 1, %s1437_s30   ;;  %s349_s22 = scalar_lea.vmem [#allocation5], %s1619_s18 }
  0x95   : > { %s346_s17 = scalar_lea.sflag [#allocation6], %s345_s11 }
  0x96   : > { %1316 = dma.done.wait (%p1770_p8), %s346_s17, 128  }
  0x97   : > { %1318 = vsyncadd (%p1770_p8), %s346_s17, 4294967168  ;;  %p1771_p11 = scmp.eq.s32.totalorder %s1437_s30, 0 }
  0x99   : > { %1320 = dma.done.wait (%p1771_p11), [#allocation6], 1024   ;;  %p1772_p2 = pmov %p1771_p11 }
  0x9b   : > { %1322 = vsyncadd (%p1772_p2), [#allocation6], 4294966272  ;;  %p1773_p12 = pmov %p1772_p2 }
  0x9c   : > { %p1774_p0 = pmov %p1772_p2 }
  0x9d   : > { %1324 = dma.done.wait (%p1773_p12), [#allocation9], 2048  }
  0x9e   : > { %1326 = vsyncadd (%p1774_p0), [#allocation9], 4294965248  ;;  %v1361_v0 = vmov 0.0|0.0   ;;  %vm1362_vm0 = vmmov 0   ;;  %v1363_v1 = vmov 0.0   ;;  %v408_v2 = vld [vmem:[#allocation7] sm:$0xff]  ;;  %v418_v18 = vlaneseq }
  0x9f   : > { %993 = vmatprep.subr.bf16.mxu1 %v1361_v0  ;;  %936 = vmatprep.mubr.msk.f32.mxu1 %vm1362_vm0, %v1363_v1  ;;  %v409_v3 = vld [vmem:[#allocation7 + $0x8] sm:$0xff]  ;;  %v410_v4 = vld [vmem:[#allocation7 + $0x10] sm:$0xff]  ;;  %v411_v6 = vld [vmem:[#allocation7 + $0x18] sm:$0xff]  ;;  %vm423_vm1 = vcmask 523264   ;;  %p399_p1 = scmp.lt.s32.totalorder %s1345_s27, 1  ;;  %s1364_s12 = smov 64  }
  0xa0   : > { %1017 = vmatprep.subr.bf16.mxu0 %v1361_v0  ;;  %990 = vmatprep.mubr.msk.f32.mxu0 %vm1362_vm0, %v1363_v1  ;;  %v994_v5 = vpack.c.bf16 %v409_v3, %v408_v2  ;;  %v997_v7 = vpack.c.bf16 %v411_v6, %v410_v4  ;;  %v412_v8 = vld [vmem:[#allocation7 + $0x20] sm:$0xff]  ;;  %v413_v9 = vld [vmem:[#allocation7 + $0x28] sm:$0xff]  ;;  %v414_v11 = vld [vmem:[#allocation7 + $0x30] sm:$0xff]  ;;  %v1664_v19 = vshrl.u32 %v418_v18, 7  ;;  %vm599_vm2 = vcmask 1046528   ;;  %s882_s8 = sshll.u32 %s1345_s27, 7 }
  0xa1   : > { %v1000_v10 = vpack.c.bf16 %v413_v9, %v412_v8  ;;  %v415_v12 = vld [vmem:[#allocation7 + $0x38] sm:$0xff]  ;;  %v405_v14 = vld [vmem:[%s340_s13] sm:$0xff]  ;;  %s400_s30 = scalar_select %p399_p1, %s1345_s27, 1  ;;  %v617_v38 = vld [vmem:[#allocation8 + $0x10] sm:$0xff] }
  0xa2   : > { %995 = vmatpush3.bf16.msra.mxu1 %v994_v5  ;;  %v1003_v13 = vpack.c.bf16 %v415_v12, %v414_v11  ;;  %v406_v15 = vld [vmem:[%s349_s22] sm:$0xff]  ;;  %v420_v20 = vsub.s32 0, %v1664_v19  ;;  %v416_v21 = vld [vmem:[%s1743_s4] sm:$0x1]  ;;  %v616_v37 = vld [vmem:[#allocation8 + $0x8] sm:$0xff]  ;;  %v606_v3 = vadd.s32 1, %v1664_v19  ;;  %s1690_s11 = scalar_lea.hbm %s1746_s7, %s882_s8 }
  0xa3   : > { %996 = vmatprep.subr.bf16.mxu1 %v1361_v0  ;;  %v407_v16 = vadd.f32 %v406_v15, %v405_v14  ;;  %s404_s19 = scalar_lea.vmem %s1741_s2, %s400_s30  ;;  %v615_v36 = vld [vmem:[#allocation8] sm:$0xff]  ;;  %v618_v40 = vld [vmem:[#allocation8 + $0x18] sm:$0xff]  ;;  %v620_v43 = vld [vmem:[#allocation8 + $0x28] sm:$0xff]  ;;  %s398_s10 = scalar_lea.vmem [#allocation10], %s1619_s18 }
  0xa4   : > { %v508_v17 = vld [vmem:[%s404_s19] sm:$0x1]  ;;  %v421_v22 = vrot.slane %v416_v21, %v420_v20  ;;  %v1018_v39 = vpack.c.bf16 %v616_v37, %v615_v36  ;;  %v1021_v41 = vpack.c.bf16 %v618_v40, %v617_v38  ;;  %v621_v45 = vld [vmem:[#allocation8 + $0x30] sm:$0xff]  ;;  %v622_v46 = vld [vmem:[#allocation8 + $0x38] sm:$0xff]  ;;  %vm607_vm3 = vcmp.lt.s32.totalorder %v606_v3, 3  ;;  %s725_s23 = sshll.u32 %s398_s10, 4  ;;  %s1692_s23 = int_to_ptr.vmem [resolvable:$true] %s725_s23 }
  0xa5   : > { %v619_v42 = vld [vmem:[#allocation8 + $0x20] sm:$0xff]  ;;  %v1027_v48 = vpack.c.bf16 %v622_v46, %v621_v45  ;;  %v624_v50 = vld [vmem:[#allocation8 + $0x48] sm:$0xff]  ;;  %v625_v52 = vld [vmem:[#allocation8 + $0x50] sm:$0xff]  ;;  %s711_s17 = scalar_lea.sflag [#allocation4], %s1616_s3  ;;  %s1259_s22 = scalar_lea.vmem %s1692_s23, 128 }
  0xa6   : > { %998 = vmatpush3.bf16.msra.mxu1 %v997_v7  ;;  %1019 = vmatpush3.bf16.msra.mxu0 %v1018_v39  ;;  %v1024_v44 = vpack.c.bf16 %v620_v43, %v619_v42  ;;  %v623_v49 = vld [vmem:[#allocation8 + $0x40] sm:$0xff]  ;;  %v626_v53 = vld [vmem:[#allocation8 + $0x58] sm:$0xff]  ;;  %v628_v56 = vld [vmem:[#allocation8 + $0x68] sm:$0xff]  ;;  %p1260_p6 = scmp.ne.s32.totalorder %s1692_s23, %s1259_s22  ;;  %p1775_p10 = scmp.ne.s32.totalorder %s1766_s14, 0 }
  0xa7   : > { %999 = vmatprep.subr.bf16.mxu1 %v1361_v0  ;;  %1020 = vmatprep.subr.bf16.mxu0 %v1361_v0  ;;  %v1030_v51 = vpack.c.bf16 %v624_v50, %v623_v49  ;;  %v1033_v54 = vpack.c.bf16 %v626_v53, %v625_v52  ;;  %v627_v55 = vld [vmem:[#allocation8 + $0x60] sm:$0xff]  ;;  %v629_v58 = vld [vmem:[#allocation8 + $0x70] sm:$0xff]  ;;  %v630_v59 = vld [vmem:[#allocation8 + $0x78] sm:$0xff]  ;;  %s1365_s27 = smov [#allocation10]  }
  0xa8   : > { %v1036_v57 = vpack.c.bf16 %v628_v56, %v627_v55  ;;  %v1039_v60 = vpack.c.bf16 %v630_v59, %v629_v58  ;;  %v880_v8 = vld [vmem:[%s1745_s6] ss:$0 sm:$0xff]  ;;  %p1261_p3 = pnand %p1260_p6, %p1775_p10  ;;  %s1263_s18 = sshll.u32 %s1365_s27, 4  ;;  %s1264_s18 = int_to_ptr.vmem [resolvable:$false] %s1263_s18 }
  0xa9   : > { %s1265_s30 = scalar_lea.vmem %s1264_s18, 256  ;;  %p1266_p9 = scmp.lt.s32.totalorder %s1692_s23, %s1264_s18 }
  0xaa   : > { %1001 = vmatpush3.bf16.msra.mxu1 %v1000_v10  ;;  %1022 = vmatpush3.bf16.msra.mxu0 %v1021_v41  ;;  %p1262_p4 = pneg %p1261_p3  ;;  %p1267_p5 = scmp.lt.s32.totalorder %s1265_s30, %s1259_s22 }
  0xab   : > { %1002 = vmatprep.subr.bf16.mxu1 %v1361_v0  ;;  %1023 = vmatprep.subr.bf16.mxu0 %v1361_v0 }
  0xac   : > { %p1268_p7 = por %p1267_p5, %p1266_p9 }
  0xae   : > { %1004 = vmatpush3.bf16.msra.mxu1 %v1003_v13  ;;  %1025 = vmatpush3.bf16.msra.mxu0 %v1024_v44  ;;  %p1269_p13 = pnand %p1268_p7, %p1262_p4 }
  0xaf   : > { %1005 = vmatprep.subr.bf16.mxu1 %v1361_v0  ;;  %1026 = vmatprep.subr.bf16.mxu0 %v1361_v0 }
  0xb1   : > { %937 = vmatmul.mubr.msk.f32.vlgmr.msra.gmra.mrb[0].mxu1 %vm423_vm1, %v407_v16 }
  0xb2   : > { %1007 = vmatpush3.bf16.msra.mxu1 %v994_v5  ;;  %955 = vmatprep.mubr.msk.f32.mxu1 %vm1362_vm0, %v1363_v1 }
  0xb3   : > { %1008 = vmatprep.subr.bf16.mxu1 %v1361_v0  ;;  %1028 = vmatpush3.bf16.msra.mxu0 %v1027_v48 }
  0xb4   : > { %1029 = vmatprep.subr.bf16.mxu0 %v1361_v0 }
  0xb6   : > { %1010 = vmatpush3.bf16.msra.mxu1 %v997_v7 }
  0xb7   : > { %1011 = vmatprep.subr.bf16.mxu1 %v1361_v0  ;;  %1031 = vmatpush3.bf16.msra.mxu0 %v1030_v51 }
  0xb8   : > { %1032 = vmatprep.subr.bf16.mxu0 %v1361_v0 }
  0xba   : > { %1013 = vmatpush3.bf16.msra.mxu1 %v1000_v10 }
  0xbb   : > { %1014 = vmatprep.subr.bf16.mxu1 %v1361_v0  ;;  %1034 = vmatpush3.bf16.msra.mxu0 %v1033_v54 }
  0xbc   : > { %1035 = vmatprep.subr.bf16.mxu0 %v1361_v0 }
  0xbe   : > { %1016 = vmatpush3.bf16.msra.mxu1 %v1003_v13 }
  0xbf   : > { %1037 = vmatpush3.bf16.msra.mxu0 %v1036_v57 }
  0xc0   : > { %1038 = vmatprep.subr.bf16.mxu0 %v1361_v0 }
  0xc1   : > { %956 = vmatmul.mubr.msk.f32.vlgmr.msra.gmra.mrb[2].mxu1 %vm423_vm1, %v508_v17 }
  0xc3   : > { %1040 = vmatpush3.bf16.msra.mxu0 %v1039_v60 }
 0x184   : > { %v493_v23 = vpop.f32.mrb[0].mxu1 }
 0x185   : > { %v494_v24 = vadd.f32 %v493_v23, %v421_v22  ;;  %v938_v25 = vpop.f32.mrb[1].mxu1 }
 0x187   : > { %v877_v26 = vmul.f32 -1.442695, %v494_v24 }
 0x189   : > { %1135 = vpow2.f32 %v877_v26 }
 0x193   : > { %v1136_v27 = vpop.eup %1135 }
 0x194   : > { %v500_v28 = vadd.f32 1.0, %v1136_v27  ;;  %v578_v29 = vpop.f32.mrb[2].mxu1 }
 0x195   : > { %v579_v30 = vadd.f32 %v578_v29, %v416_v21  ;;  %v957_v31 = vpop.f32.mrb[3].mxu1 }
 0x196   : > { %1137 = vrcp.f32 %v500_v28 }
 0x197   : > { %v879_v32 = vmul.f32 -1.442695, %v579_v30 }
 0x199   : > { %1139 = vpow2.f32 %v879_v32 }
 0x1a0   : > { %v1138_v33 = vpop.eup %1137 }
 0x1a1   : > { %504 = vrot.lane.b32.xlu0 %v1138_v33, %s1364_s12 }
 0x1a3   : > { %v1140_v34 = vpop.eup %1139 }
 0x1a4   : > { %v585_v35 = vadd.f32 1.0, %v1140_v34 }
 0x1a6   : > { %1141 = vrcp.f32 %v585_v35 }
 0x1b0   : > { %v1142_v47 = vpop.eup %1141 }
 0x1b1   : > { %589 = vrot.lane.b32.xlu0 %v1142_v47, %s1364_s12 }
 0x213   : > { %v505_v61 = vpop.permute.xlu0 %504 }
 0x214   : > { %v507_v62 = vmul.f32 %v505_v61, %v494_v24 }
 0x216   : > { %611 = vrot.lane.b32.xlu1 %v507_v62, %s1364_s12  ;;  %v594_v4 = vrot.slane %v507_v62, 1 }
 0x223   : > { %v590_v63 = vpop.permute.xlu0 %589 }
 0x224   : > { %v592_v1 = vmul.f32 %v590_v63, %v579_v30 }
 0x226   : > { %v597_v2 = vrot.slane %v592_v1, 1 }
 0x228   : > { %v600_v5 = vsel %vm599_vm2, %v594_v4, %v597_v2 }
 0x229   : > { %v610_v7 = vsel %vm607_vm3, %v600_v5, 0.0 }
 0x288   : > { %v612_v6 = vpop.permute.xlu1 %611 }
 0x289   : > { %v614_v0 = vsel %vm423_vm1, %v610_v7, %v612_v6 }
 0x28a   : > { %991 = vmatmul.mubr.f32.vlgmr.msra.gmra.mrb[0].mxu0 %v614_v0 }
 0x35d   : > { %v704_v9 = vpop.f32.mrb[0].mxu0 }
 0x35e   : > { %v705_v10 = vadd.f32 %v880_v8, %v704_v9  ;;  %v992_v11 = vpop.f32.mrb[1].mxu0 }
 0x360   : > { %v708_v12 = vmax.f32 %v705_v10, 0.0 }
 0x362   : > { %709 = vst [vmem:[%s398_s10] sm:$0xff] %v708_v12 }
 0x363   : > { %1272 = shalt.err (!%p1269_p13)
}
 0x364   : > { %s1273_s3 = scalar_lea.hbm %s1690_s11, 128  ;;  %s1277_s19 = scalar_lea.hbm %s1746_s7, 256 }
 0x365   : > { %p1274_p8 = scmp.ne.s32.totalorder %s1690_s11, %s1273_s3  ;;  %p1278_p12 = scmp.lt.u32.totalorder %s1690_s11, %s1746_s7 }
 0x366   : > { %p1279_p0 = scmp.lt.u32.totalorder %s1277_s19, %s1273_s3  ;;  %p1281_p6 = scmp.lt.u32.totalorder %s1273_s3, %s1690_s11 }
 0x367   : > { %p1275_p11 = pnand %p1274_p8, %p1775_p10 }
 0x368   : > { %p1280_p1 = por %p1279_p0, %p1278_p12 }
 0x369   : > { %p1276_p2 = pneg %p1275_p11 }
 0x36a   : > { %p1282_p3 = por %p1281_p6, %p1280_p1 }
 0x36c   : > { %p1283_p4 = pnand %p1282_p3, %p1276_p2 }
 0x36e   : > { %1286 = shalt.err (!%p1283_p4)
}
 0x36f   : > { %1053 = dma.vmem_to_hbm [thread:$0]  (%p1775_p10), %s1692_s23, 128, %s1690_s11, %s711_s17  }
 0x370 PF: > { %s1776_s12 = sld [smem:[#allocation17_spill]]  ;;  %s737_s28 = sand.u32 1, %s1333_s24  }
 0x371   : > { %p1778_p5 = scmp.ge.s32.totalorder %s1353_s29, 2  ;;  %s738_s16 = scalar_lea.sflag [#allocation4], %s737_s28 }
 0x376   : > { %p1777_p9 = scmp.ne.s32.totalorder %s1776_s12, 0 }
 0x378   : > { %p1070_p7 = pnand %p1778_p5, %p1777_p9 }
 0x37a   : > { %1328 = dma.done.wait (!%p1070_p7), %s738_s16, 128  }
 0x37b   : > { %1330 = vsyncadd (!%p1070_p7), %s738_s16, 4294967168  ;;  %s27_s29 = sadd.s32 1, %s1353_s29   ;;  %s1779_s14 = sld [smem:[#allocation19_spill]] }
 0x37c   : > { %p24_p13 = scmp.ge.s32.totalorder %s27_s29, 4   ;;  %s1780_s27 = sld [smem:[#allocation16_spill]] }
 0x37d   : > { %s1781_s28 = sld [smem:[#allocation18_spill]]  ;;  %s1782_s24 = smov %s1337_s25 }
 0x37e   : > { %s1783_s25 = smov %s1341_s26  ;;  %26 = sbr.rel (!%p24_p13) target bundleno = 12 (0xc), region = 117 }
 0x381   : > { %s1784_s26 = smov %s1779_s14 }
 0x385   :  { %743 = vsyncpa [#allocation3], 1 }
 0x386   :  { %745 = vsyncpa [#allocation3 + $0x1], 1 }
 0x387   :  { %746 = vsyncpa [#allocation6], 1 }
 0x388   :  { %748 = vsyncpa [#allocation6 + $0x1], 1 }
 0x389   :  { %749 = vsyncpa [#allocation9], 1 }
 0x38a   :  { %750 = vsyncpa [#allocation4], 1 }
 0x38b   :  { %752 = vsyncpa [#allocation4 + $0x1], 1 }

</bundles_post_ra>
